<compile_context>
chip_gen: v6e
topology: v6e:2x2x1
jax: 0.10.0
libtpu: 0.0.40
codegen_flags: <defaults>
</compile_context>

<pallas_src>
import functools
import math

import jax
import jax.numpy as jnp
from jax.experimental import pallas as pl
from jax.experimental.pallas import tpu as pltpu


def decide_hs(d: int) -> int:
    if d < 4:
        return 4
    if d < 16:
        return d
    if d < 64:
        return int(1.5 * d)
    return min(int(1.5 * d), 256)


def _cln_kernel(x_ref, w1_ref, b1_ref, w2_ref, b2_ref, w3_ref, b3_ref, y_ref):
    """One batch tile: relu(relu(x@W1+b1)@W2+b2), then (1,H)-row mul-reduce + sigmoid."""
    x = x_ref[...]                                                   # (tn, d)
    h1 = jnp.dot(x, w1_ref[...], preferred_element_type=jnp.float32) + b1_ref[...]
    h1 = jnp.maximum(h1, 0.0)
    h2 = jnp.dot(h1.astype(w2_ref.dtype), w2_ref[...],
                 preferred_element_type=jnp.float32) + b2_ref[...]
    h2 = jnp.maximum(h2, 0.0)
    # Final (H -> 1) layer: VPU multiply + XLU lane reduce instead of a
    # degenerate 1-column MXU matmul; W3 is stored as a (1, H) f32 row.
    logits = jnp.sum(h2 * w3_ref[...], axis=-1, keepdims=True) + b3_ref[0, 0]
    y_ref[...] = jax.nn.sigmoid(logits)
    # TODO(synk): optional lane-dense (tn//128, 128) output layout for unmasked
    # vst stores; skipped since the (n,1) output is a negligible fraction of traffic.


@functools.partial(jax.jit, static_argnames=("tile_n",))
def _cln_forward_impl(x, w1, b1, w2, b2, w3, b3, *, tile_n):
    n, d = x.shape
    hidden = w1.shape[1]
    n_steps = pl.cdiv(n, tile_n)
    grid = (n_steps,)

    x_item = x.dtype.itemsize
    w_item = w1.dtype.itemsize

    # Advisory cost estimate for the XLA scheduler.
    n_eff = n_steps * tile_n
    cost = pl.CostEstimate(
        flops=2 * n_eff * hidden * (d + hidden + 1),
        transcendentals=2 * n_eff,                       # sigmoid: exp + reciprocal
        bytes_accessed=(n_eff * d * x_item + 4 * n_eff
                        + (d * hidden + hidden * hidden) * w_item
                        + 4 * (3 * hidden + 1)),
    )

    # VMEM budget: double-buffered x tile + (double-buffered) resident params
    # + f32 intermediates + margin; capped at 48 MiB for v7x's 64 MiB VMEM.
    vmem_limit = (2 * tile_n * d * x_item
                  + 2 * ((d * hidden + hidden * hidden) * w_item + 4 * (3 * hidden + 8))
                  + 4 * tile_n * hidden * 4
                  + 2 * tile_n * 4
                  + (4 << 20))
    vmem_limit = int(min(max(vmem_limit, 32 << 20), 48 << 20))

    y = pl.pallas_call(
        _cln_kernel,
        out_shape=jax.ShapeDtypeStruct((n, 1), jnp.float32),
        grid_spec=pltpu.PrefetchScalarGridSpec(
            num_scalar_prefetch=0,
            grid=grid,
            in_specs=[
                pl.BlockSpec((tile_n, d), lambda i: (i, 0)),          # x tile (pipelined)
                pl.BlockSpec((d, hidden), lambda i: (0, 0)),          # W1 resident
                pl.BlockSpec((1, hidden), lambda i: (0, 0)),          # b1 resident
                pl.BlockSpec((hidden, hidden), lambda i: (0, 0)),     # W2 resident
                pl.BlockSpec((1, hidden), lambda i: (0, 0)),          # b2 resident
                pl.BlockSpec((1, hidden), lambda i: (0, 0)),          # W3 row resident
                pl.BlockSpec(memory_space=pltpu.MemorySpace.SMEM),    # b3 scalar in SMEM
            ],
            out_specs=pl.BlockSpec((tile_n, 1), lambda i: (i, 0)),
        ),
        compiler_params=pltpu.CompilerParams(
            dimension_semantics=("parallel",),
            vmem_limit_bytes=vmem_limit,
        ),
        cost_estimate=cost,
    )(x, w1, b1, w2, b2, w3, b3)
    return y


def _choose_tile_n(n: int, d: int) -> int:
    """Pick the batch tile: ~1 MiB of f32 x per grid step, pow2-quantized,
    halved until there are >=2 grid steps (v7x has 2 TensorCores)."""
    tn = (1 << 18) // max(d, 1)            # 262144 // d rows ~= 1 MiB of f32 x
    tn = max(256, min(tn, 8192))
    tn = 1 << (tn.bit_length() - 1)        # round down to a power of two
    if n >= 16:
        while tn * 2 > n and tn > 8:
            tn //= 2
    else:
        tn = 8
    return max(8, tn)


def cln_forward(x, w1, b1, w2, b2, w3, b3, *, tile_n=None, use_bf16=False):
    """Forward pass of DeepNeuralNetworkCLN. Returns (y_predicted, 0)."""
    in_dtype = jnp.bfloat16 if use_bf16 else jnp.float32
    x = x.astype(in_dtype)                 # mirrors input.to(torch.float32)
    w1 = w1.astype(in_dtype)
    w2 = w2.astype(in_dtype)
    b1 = b1.astype(jnp.float32)
    b2 = b2.astype(jnp.float32)
    w3 = w3.astype(jnp.float32)
    b3 = b3.astype(jnp.float32)

    n, d = x.shape
    tn = int(tile_n) if tile_n is not None else _choose_tile_n(n, d)
    tn = max(8, (tn // 8) * 8)             # sublane alignment
    y = _cln_forward_impl(x, w1, b1, w2, b2, w3, b3, tile_n=tn)
    return y, 0


def init_params(key, d):
    """nn.Linear-style U(-1/sqrt(fan_in), 1/sqrt(fan_in)) init.

    Weights stored (in, out); W3 stored as a (1, H) row; b3 as (1, 1)."""
    hidden = decide_hs(d)
    ks = jax.random.split(key, 6)
    bd = 1.0 / math.sqrt(d)
    bh = 1.0 / math.sqrt(hidden)
    w1 = jax.random.uniform(ks[0], (d, hidden), jnp.float32, -bd, bd)
    b1 = jax.random.uniform(ks[1], (1, hidden), jnp.float32, -bd, bd)
    w2 = jax.random.uniform(ks[2], (hidden, hidden), jnp.float32, -bh, bh)
    b2 = jax.random.uniform(ks[3], (1, hidden), jnp.float32, -bh, bh)
    w3 = jax.random.uniform(ks[4], (1, hidden), jnp.float32, -bh, bh)
    b3 = jax.random.uniform(ks[5], (1, 1), jnp.float32, -bh, bh)
    return w1, b1, w2, b2, w3, b3


def _reference(x, w1, b1, w2, b2, w3, b3):
    x = x.astype(jnp.float32)
    h1 = jnp.maximum(x @ w1 + b1, 0.0)
    h2 = jnp.maximum(h1 @ w2 + b2, 0.0)
    return jax.nn.sigmoid(h2 @ w3.T + b3)


if __name__ == "__main__":
    key = jax.random.PRNGKey(0)
    k_x, k_p, k_x2 = jax.random.split(key, 3)

    # Small shapes consistent with the module: batch=8, features=16 -> hidden=24.
    N, d = 8, 16
    x = jax.random.normal(k_x, (N, d), dtype=jnp.float32)
    params = init_params(k_p, d)

    y_pred, zero = cln_forward(x, *params)
    jax.block_until_ready(y_pred)
    assert y_pred.shape == (N, 1) and zero == 0
    assert jnp.allclose(y_pred, _reference(x, *params), atol=1e-5)

    # Ragged multi-tile path: n=40 with a 16-row tile -> grid=(3,), last tile partial.
    N2 = 40
    x2 = jax.random.normal(k_x2, (N2, d), dtype=jnp.float32)
    y2, _ = cln_forward(x2, *params, tile_n=16)
    jax.block_until_ready(y2)
    assert y2.shape == (N2, 1)
    assert jnp.allclose(y2, _reference(x2, *params), atol=1e-5)

    # Auto-chosen tile (pow2 quantized, >=2 grid steps) on the same data.
    y3, _ = cln_forward(x2, *params)
    jax.block_until_ready(y3)
    assert jnp.allclose(y3, _reference(x2, *params), atol=1e-5)

    # Optional bf16 MXU path (looser tolerance vs the f32 reference).
    y4, _ = cln_forward(x2, *params, use_bf16=True)
    jax.block_until_ready(y4)
    assert jnp.allclose(y4, _reference(x2, *params), atol=5e-2)

    print("KERNEL_OK")
</pallas_src>

<mosaic_0001>
module attributes {stable_mosaic.version = 11 : i64} {
  func.func @_cln_kernel(%arg0: i32, %arg1: memref<8x16xf32, #tpu.memory_space<vmem>>, %arg2: memref<16x24xf32, #tpu.memory_space<vmem>>, %arg3: memref<1x24xf32, #tpu.memory_space<vmem>>, %arg4: memref<24x24xf32, #tpu.memory_space<vmem>>, %arg5: memref<1x24xf32, #tpu.memory_space<vmem>>, %arg6: memref<1x24xf32, #tpu.memory_space<vmem>>, %arg7: memref<1x1xf32, #tpu.memory_space<smem>>, %arg8: memref<8x1xf32, #tpu.memory_space<vmem>>) attributes {dimension_semantics = [#tpu.dimension_semantics<parallel>], iteration_bounds = array<i64: 1>, scalar_prefetch = 0 : i64, scratch_operands = 0 : i64, tpu.core_type = #tpu.core_type<tc>, window_params = [{transform_indices = @transform_0, window_bounds = array<i64: 8, 16>}, {pipeline_mode = #tpu.pipeline_mode<synchronous>, transform_indices = @transform_1, window_bounds = array<i64: 16, 24>}, {pipeline_mode = #tpu.pipeline_mode<synchronous>, transform_indices = @transform_2, window_bounds = array<i64: 1, 24>}, {pipeline_mode = #tpu.pipeline_mode<synchronous>, transform_indices = @transform_3, window_bounds = array<i64: 24, 24>}, {pipeline_mode = #tpu.pipeline_mode<synchronous>, transform_indices = @transform_4, window_bounds = array<i64: 1, 24>}, {pipeline_mode = #tpu.pipeline_mode<synchronous>, transform_indices = @transform_5, window_bounds = array<i64: 1, 24>}, {transform_indices = @transform_6, window_bounds = array<i64: 1, 1>}, {transform_indices = @transform_7, window_bounds = array<i64: 8, 1>}]} {
    %c0 = arith.constant 0 : index
    %c0_0 = arith.constant 0 : index
    %0 = vector.load %arg1[%c0, %c0_0] : memref<8x16xf32, #tpu.memory_space<vmem>>, vector<8x16xf32>
    %c0_1 = arith.constant 0 : index
    %c0_2 = arith.constant 0 : index
    %1 = vector.load %arg2[%c0_1, %c0_2] : memref<16x24xf32, #tpu.memory_space<vmem>>, vector<16x24xf32>
    %cst = arith.constant dense<0.000000e+00> : vector<8x24xf32>
    %2 = tpu.matmul %0, %1, %cst {dimension_numbers = #tpu.dot_dimension_numbers<[1], [0], [0], [1], [0, 0, 1, 1], [], []>} : vector<8x16xf32>, vector<16x24xf32>, vector<8x24xf32> -> vector<8x24xf32>
    %c0_3 = arith.constant 0 : index
    %c0_4 = arith.constant 0 : index
    %3 = vector.load %arg3[%c0_3, %c0_4] : memref<1x24xf32, #tpu.memory_space<vmem>>, vector<1x24xf32>
    %4 = vector.broadcast %3 : vector<1x24xf32> to vector<8x24xf32>
    %5 = arith.addf %2, %4 : vector<8x24xf32>
    %cst_5 = arith.constant 0.000000e+00 : f32
    %6 = vector.broadcast %cst_5 : f32 to vector<8x24xf32>
    %7 = arith.maximumf %5, %6 : vector<8x24xf32>
    %c0_6 = arith.constant 0 : index
    %c0_7 = arith.constant 0 : index
    %8 = vector.load %arg4[%c0_6, %c0_7] : memref<24x24xf32, #tpu.memory_space<vmem>>, vector<24x24xf32>
    %cst_8 = arith.constant dense<0.000000e+00> : vector<8x24xf32>
    %9 = tpu.matmul %7, %8, %cst_8 {dimension_numbers = #tpu.dot_dimension_numbers<[1], [0], [0], [1], [0, 0, 1, 1], [], []>} : vector<8x24xf32>, vector<24x24xf32>, vector<8x24xf32> -> vector<8x24xf32>
    %c0_9 = arith.constant 0 : index
    %c0_10 = arith.constant 0 : index
    %10 = vector.load %arg5[%c0_9, %c0_10] : memref<1x24xf32, #tpu.memory_space<vmem>>, vector<1x24xf32>
    %11 = vector.broadcast %10 : vector<1x24xf32> to vector<8x24xf32>
    %12 = arith.addf %9, %11 : vector<8x24xf32>
    %cst_11 = arith.constant 0.000000e+00 : f32
    %13 = vector.broadcast %cst_11 : f32 to vector<8x24xf32>
    %14 = arith.maximumf %12, %13 : vector<8x24xf32>
    %c0_12 = arith.constant 0 : index
    %c0_13 = arith.constant 0 : index
    %15 = vector.load %arg6[%c0_12, %c0_13] : memref<1x24xf32, #tpu.memory_space<vmem>>, vector<1x24xf32>
    %16 = vector.broadcast %15 : vector<1x24xf32> to vector<8x24xf32>
    %17 = arith.mulf %14, %16 : vector<8x24xf32>
    %cst_14 = arith.constant dense<0.000000e+00> : vector<8xf32>
    %18 = vector.multi_reduction <add>, %17, %cst_14 [1] : vector<8x24xf32> to vector<8xf32>
    %19 = vector.shape_cast %18 : vector<8xf32> to vector<8x1xf32>
    %c0_15 = arith.constant 0 : index
    %c0_16 = arith.constant 0 : index
    %20 = memref.load %arg7[%c0_15, %c0_16] : memref<1x1xf32, #tpu.memory_space<smem>>
    %21 = vector.broadcast %20 : f32 to vector<8x1xf32>
    %22 = arith.addf %19, %21 : vector<8x1xf32>
    %23 = arith.negf %22 : vector<8x1xf32>
    %24 = math.exp %23 : vector<8x1xf32>
    %cst_17 = arith.constant 1.000000e+00 : f32
    %25 = vector.broadcast %cst_17 : f32 to vector<8x1xf32>
    %26 = arith.addf %25, %24 : vector<8x1xf32>
    %27 = arith.divf %25, %26 : vector<8x1xf32>
    %c0_18 = arith.constant 0 : index
    %c0_19 = arith.constant 0 : index
    %28 = vector.load %arg8[%c0_18, %c0_19] : memref<8x1xf32, #tpu.memory_space<vmem>>, vector<8x1xf32>
    tpu.vector_store %arg8[%c0_18, %c0_19], %27 {strides = array<i32>} : memref<8x1xf32, #tpu.memory_space<vmem>>, vector<8x1xf32>,
    return
  }
  func.func @transform_0(%arg0: i32) -> (i32, i32) {
    %c0_i32 = arith.constant 0 : i32
    %c0_i32_0 = arith.constant 0 : i32
    return %arg0, %c0_i32 : i32, i32
  }
  func.func @transform_1(%arg0: i32) -> (i32, i32) {
    %c0_i32 = arith.constant 0 : i32
    %c0_i32_0 = arith.constant 0 : i32
    %c0_i32_1 = arith.constant 0 : i32
    return %c0_i32, %c0_i32_0 : i32, i32
  }
  func.func @transform_2(%arg0: i32) -> (i32, i32) {
    %c0_i32 = arith.constant 0 : i32
    %c0_i32_0 = arith.constant 0 : i32
    %c0_i32_1 = arith.constant 0 : i32
    return %c0_i32, %c0_i32_0 : i32, i32
  }
  func.func @transform_3(%arg0: i32) -> (i32, i32) {
    %c0_i32 = arith.constant 0 : i32
    %c0_i32_0 = arith.constant 0 : i32
    %c0_i32_1 = arith.constant 0 : i32
    return %c0_i32, %c0_i32_0 : i32, i32
  }
  func.func @transform_4(%arg0: i32) -> (i32, i32) {
    %c0_i32 = arith.constant 0 : i32
    %c0_i32_0 = arith.constant 0 : i32
    %c0_i32_1 = arith.constant 0 : i32
    return %c0_i32, %c0_i32_0 : i32, i32
  }
  func.func @transform_5(%arg0: i32) -> (i32, i32) {
    %c0_i32 = arith.constant 0 : i32
    %c0_i32_0 = arith.constant 0 : i32
    %c0_i32_1 = arith.constant 0 : i32
    return %c0_i32, %c0_i32_0 : i32, i32
  }
  func.func @transform_6(%arg0: i32) -> (i32, i32) {
    %c0_i32 = arith.constant 0 : i32
    %c0_i32_0 = arith.constant 0 : i32
    %c0_i32_1 = arith.constant 0 : i32
    return %c0_i32, %c0_i32_0 : i32, i32
  }
  func.func @transform_7(%arg0: i32) -> (i32, i32) {
    %c0_i32 = arith.constant 0 : i32
    %c0_i32_0 = arith.constant 0 : i32
    return %arg0, %c0_i32 : i32, i32
  }
}

</mosaic_0001>

<bundles_post_ra>
// kernel: _cln_forward_impl.1
= control target key start
LH: loop header
LB: loop body
LE: loop exit
PB: predicated region body
PF: predicated region fallthrough
CT: control target
= control target key end

     0   :  { %13 = vsyncpa [#allocation4], 0  ;;  %s439_s0 = inlined_call_operand.hbm [shape: f32[8,16], index: 0, kind: input, shape index: {}]   ;;  %s440_s1 = inlined_call_operand.hbm [shape: f32[16,24], index: 1, kind: input, shape index: {}]   ;;  %s441_s2 = inlined_call_operand.vmem [shape: f32[1,24], index: 2, kind: input, shape index: {}]   ;;  %s442_s3 = inlined_call_operand.hbm [shape: f32[24,24], index: 3, kind: input, shape index: {}]   ;;  %s443_s4 = inlined_call_operand.vmem [shape: f32[1,24], index: 4, kind: input, shape index: {}]   ;;  %s444_s5 = inlined_call_operand.vmem [shape: f32[1,24], index: 5, kind: input, shape index: {}]   ;;  %s445_s6 = inlined_call_operand.<no memory space> [shape: f32[1,1], index: 6, kind: input, shape index: {}]   ;;  %s446_s7 = inlined_call_operand.vmem [shape: f32[8,1], index: 7, kind: output, shape index: {}]  }
   0x1   :  { %14 = vsyncpa [#allocation6], 0  ;;  %s368_s24 = smov [#allocation5]  }
   0x2   :  { %s30_s25 = sshll.u32 %s368_s24, 4  ;;  %s31_s25 = int_to_ptr.vmem [resolvable:$true] %s30_s25 }
   0x3   :  { %s312_s26 = scalar_lea.vmem %s31_s25, 256  ;;  %p317_p1 = scmp.lt.s32.totalorder %s31_s25, %s31_s25 }
   0x4   :  { %p313_p0 = scmp.ne.s32.totalorder %s31_s25, %s312_s26  ;;  %p318_p2 = scmp.lt.s32.totalorder %s312_s26, %s312_s26 }
   0x6   :  { %p319_p3 = por %p318_p2, %p317_p1 }
   0x8   :  { %p320_p4 = pnand %p319_p3, %p313_p0 }
   0xa   :  { %323 = shalt.err (!%p320_p4)
}
   0xb   :  { %s369_s27 = smov 128   ;;  %s370_s28 = smov 8  }
   0xc   :  { %36 = dma.hbm_to_vmem [thread:$0]  %s440_s1, 256, %s31_s25, [#allocation6], %s369_s27, %s369_s27, %s370_s28  }
   0xd   :  { %s371_s8 = smov [#allocation3]   ;;  %s372_s10 = smov [#allocation7]  }
   0xe   :  { %s21_s9 = sshll.u32 %s371_s8, 4  ;;  %s44_s11 = sshll.u32 %s372_s10, 4  ;;  %s22_s9 = int_to_ptr.vmem [resolvable:$true] %s21_s9  ;;  %s45_s11 = int_to_ptr.vmem [resolvable:$true] %s44_s11 }
   0xf   :  { %s332_s12 = scalar_lea.vmem %s22_s9, 128  ;;  %p337_p6 = scmp.lt.s32.totalorder %s22_s9, %s22_s9 }
  0x10   :  { %p333_p5 = scmp.ne.s32.totalorder %s22_s9, %s332_s12  ;;  %p338_p7 = scmp.lt.s32.totalorder %s332_s12, %s332_s12 }
  0x12   :  { %p339_p8 = por %p338_p7, %p337_p6 }
  0x14   :  { %p340_p9 = pnand %p339_p8, %p333_p5 }
  0x16   :  { %343 = shalt.err (!%p340_p9)
}
  0x17   :  { %24 = dma.hbm_to_vmem [thread:$0]  %s439_s0, 128, %s22_s9, [#allocation4]  }
  0x18   :  { %s352_s15 = scalar_lea.vmem %s45_s11, 384  ;;  %p357_p11 = scmp.lt.s32.totalorder %s45_s11, %s45_s11 }
  0x19   :  { %p353_p10 = scmp.ne.s32.totalorder %s45_s11, %s352_s15  ;;  %p358_p12 = scmp.lt.s32.totalorder %s352_s15, %s352_s15 }
  0x1b   :  { %p359_p13 = por %p358_p12, %p357_p11 }
  0x1d   :  { %p360_p0 = pnand %p359_p13, %p353_p10 }
  0x1f   :  { %363 = shalt.err (!%p360_p0)
}
  0x20   :  { %50 = dma.hbm_to_vmem [thread:$0]  %s442_s3, 384, %s45_s11, [#allocation6], %s369_s27, %s369_s27, %s370_s28  }
  0x21   :  { %364 = dma.done.wait [#allocation4], 128  }
  0x22   :  { %365 = vsyncadd [#allocation4], 4294967168 }
  0x23   :  { %366 = dma.done.wait [#allocation6], 640  }
  0x24   :  { %367 = vsyncadd [#allocation6], 4294966656  ;;  %v373_v0 = vmov 0.0   ;;  %vm374_vm0 = vmmov 0   ;;  %v68_v1 = vld [vmem:[#allocation5 + $0x8] sm:$0xff]  ;;  %v67_v2 = vld [vmem:[#allocation5] sm:$0xff]  ;;  %v248_v20 = vstv %s445_s6 }
  0x25   :  { %277 = vmatprep.subr.mxu0 %v373_v0  ;;  %281 = vmatprep.mubr.msk.f32.mxu0 %vm374_vm0, %v373_v0  ;;  %v66_v3 = vld [vmem:[#allocation3] sm:$0xff]  ;;  %vm76_vm1 = vcmask 130048   ;;  %v153_v4 = vld [vmem:[#allocation7 + $0x10] sm:$0xff]  ;;  %v151_v6 = vld [vmem:[#allocation7] sm:$0xff]  ;;  %vm161_vm2 = vcmask 195584   ;;  %vm256_vm3 = vcmask 7168  }
  0x26   :  { %284 = vmatprep.subr.mxu1 %v373_v0  ;;  %290 = vmatprep.mubr.msk.f32.mxu1 %vm374_vm0, %v373_v0  ;;  %v152_v5 = vld [vmem:[#allocation7 + $0x8] sm:$0xff] }
  0x27   :  { %278 = vmatpush3.msra.mxu0 %v68_v1  ;;  %285 = vmatpush3.msra.mxu1 %v153_v4  ;;  %v264_v7 = vld [vmem:[%s441_s2] ss:$0 sm:$0xff] }
  0x28   :  { %279 = vmatprep.subr.mxu0 %v373_v0  ;;  %286 = vmatprep.subr.mxu1 %v373_v0  ;;  %v266_v12 = vld [vmem:[%s443_s4] ss:$0 sm:$0xff] }
  0x29   :  { %280 = vmatpush3.msra.mxu0 %v67_v2  ;;  %287 = vmatpush3.msra.mxu1 %v152_v5  ;;  %v268_v16 = vld [vmem:[%s444_s5] ss:$0 sm:$0xff] }
  0x2a   :  { %282 = vmatmul.mubr.msk.f32.vlgmr.msra.gmra.mxu0 %vm76_vm1, %v66_v3  ;;  %288 = vmatprep.subr.mxu1 %v373_v0 }
  0x2b   :  { %289 = vmatpush3.msra.mxu1 %v151_v6 }
  0xea   :  { %v146_v8 = vpop.f32.mrf.mxu0 }
  0xeb   :  { %v147_v9 = vadd.f32 %v264_v7, %v146_v8 }
  0xec   :  { %v283_v10 = vpop.f32.mrf.mxu0 }
  0xed   :  { %v150_v11 = vmax.f32 %v147_v9, 0.0 }
  0xef   :  { %291 = vmatmul.mubr.msk.f32.vlgmr.msra.gmra.mxu1 %vm161_vm2, %v150_v11 }
 0x1af   :  { %v231_v13 = vpop.f32.mrf.mxu1 }
 0x1b0   :  { %v232_v14 = vadd.f32 %v266_v12, %v231_v13 }
 0x1b1   :  { %v292_v15 = vpop.f32.mrf.mxu1 }
 0x1b2   :  { %v235_v17 = vmax.f32 %v232_v14, 0.0 }
 0x1b4   :  { %v243_v18 = vmul.f32 %v268_v16, %v235_v17 }
 0x1b6   :  { %v244_v19 = vsel %vm161_vm2, %v243_v18, 0.0 }
 0x1b7   :  { %245 = vadd.xlane.f32.xlu0 %v244_v19 }
 0x240   :  { %v246_v21 = vpop.xlane.xlu0 %245 }
 0x241   :  { %v249_v22 = vadd.f32 %v248_v20, %v246_v21 }
 0x243   :  { %v269_v23 = vmul.f32 -1.442695, %v249_v22 }
 0x245   :  { %300 = vpow2.f32 %v269_v23 }
 0x252   :  { %v301_v24 = vpop.eup %300 }
 0x253   :  { %v253_v25 = vadd.f32 1.0, %v301_v24 }
 0x255   :  { %302 = vrcp.f32 %v253_v25 }
 0x262   :  { %v303_v26 = vpop.eup %302 }
 0x263   :  { %257 = vst.msk [vmem:[%s446_s7] sm:$0xff] %vm256_vm3, %v303_v26 }
 0x264   :  { %262 = vsyncpa [#allocation4], 1 }
 0x265   :  { %263 = vsyncpa [#allocation6], 1 }

</bundles_post_ra>
